<compile_context>
chip_gen: v6e
topology: v6e:2x2x1
jax: 0.10.0
libtpu: 0.0.40
codegen_flags: <defaults>
</compile_context>

<pallas_src>
import jax
import jax.numpy as jnp
from jax.experimental import pallas as pl
from jax.experimental.pallas import tpu as pltpu


def _round_up(x, m):
    return (x + m - 1) // m * m


def _generator_kernel(z_ref, w1_ref, b1_ref, w2_ref, b2_ref, o_ref):
    # Linear 1 on the MXU with f32 accumulation; bias + ReLU in f32 on the VPU.
    h = jnp.dot(z_ref[...], w1_ref[...], preferred_element_type=jnp.float32)
    h = jnp.maximum(h + b1_ref[...], 0.0)

    # Linear 2 (operands in the weights' dtype, f32 accumulation) + bias.
    y = jnp.dot(h.astype(w2_ref.dtype), w2_ref[...],
                preferred_element_type=jnp.float32)
    y = y + b2_ref[...]

    # Exact sigmoid = 1 / (1 + exp(-y)); kernel is DMA-bound so exp/div are free.
    o_ref[...] = (1.0 / (1.0 + jnp.exp(-y))).astype(o_ref.dtype)


def prepare_generator_params(w1, b1, w2, b2, io_dtype=jnp.bfloat16):
    """One-time parameter preprocessing, hoisted out of the forward path.

    Matmul operands (W1, W2) are cast to io_dtype (bf16 by default: native on
    the MXU on v5e/v6e/v7x and halves weight/activation HBM traffic). Biases
    stay f32 because all elementwise math runs in f32.
    """
    wt = jnp.float32 if io_dtype is None else io_dtype
    return (w1.astype(wt),
            b1.reshape(1, -1).astype(jnp.float32),
            w2.astype(wt),
            b2.reshape(1, -1).astype(jnp.float32))


def generator_forward(z, w1, b1, w2, b2, *, block_b=4096, out_dtype=jnp.float32):
    """z: (B, latent_dim) -> (B, data_dim) in out_dtype.

    Params should come from prepare_generator_params (W1/W2 possibly bf16,
    biases f32). z is cast to W1's dtype here.
    """
    B, latent_dim = z.shape
    hidden = w1.shape[1]
    data_dim = w2.shape[1]

    z = z.astype(w1.dtype)

    # Batch tile: multiple of 8 sublanes; >= 2 tiles for moderate B so
    # dimension_semantics=("parallel",) actually uses both v7x TensorCores.
    tb = min(block_b, max(8, _round_up(pl.cdiv(B, 2), 8)))
    b_pad = _round_up(B, tb)
    if b_pad != B:
        z = jnp.pad(z, ((0, b_pad - B), (0, 0)))

    grid = (b_pad // tb,)

    # TODO(synk): latent_dim=16 under-fills the MXU K dim and lane-pads the z
    # tile in VMEM, but the kernel is HBM-bound; padding latent to 128 would
    # only add HBM read traffic, so it is intentionally left as-is.

    out_itemsize = jnp.dtype(out_dtype).itemsize
    cost = pl.CostEstimate(
        flops=2 * b_pad * (latent_dim * hidden + hidden * data_dim),
        transcendentals=b_pad * data_dim,
        bytes_accessed=(z.size * z.dtype.itemsize
                        + w1.size * w1.dtype.itemsize
                        + w2.size * w2.dtype.itemsize
                        + (b1.size + b2.size) * 4
                        + b_pad * data_dim * out_itemsize),
    )

    out = pl.pallas_call(
        _generator_kernel,
        out_shape=jax.ShapeDtypeStruct((b_pad, data_dim), out_dtype),
        grid=grid,
        in_specs=[
            pl.BlockSpec((tb, latent_dim), lambda i: (i, 0)),      # z tile
            pl.BlockSpec((latent_dim, hidden), lambda i: (0, 0)),  # W1 resident
            pl.BlockSpec((1, hidden), lambda i: (0, 0)),           # b1 resident
            pl.BlockSpec((hidden, data_dim), lambda i: (0, 0)),    # W2 resident
            pl.BlockSpec((1, data_dim), lambda i: (0, 0)),         # b2 resident
        ],
        out_specs=pl.BlockSpec((tb, data_dim), lambda i: (i, 0)),
        compiler_params=pltpu.CompilerParams(
            dimension_semantics=("parallel",),
            vmem_limit_bytes=64 * 1024 * 1024),
        cost_estimate=cost,
    )(z, w1, b1, w2, b2)

    if b_pad != B:
        out = out[:B]
    return out


def init_generator_params(key, latent_dim, data_dim, hidden=128):
    """Deterministic init mirroring nn.Linear's U(-1/sqrt(fan_in), 1/sqrt(fan_in))."""
    k1, k2, k3, k4 = jax.random.split(key, 4)
    bound1 = 1.0 / jnp.sqrt(latent_dim)
    bound2 = 1.0 / jnp.sqrt(hidden)
    w1 = jax.random.uniform(k1, (latent_dim, hidden), jnp.float32, -bound1, bound1)
    b1 = jax.random.uniform(k2, (1, hidden), jnp.float32, -bound1, bound1)
    w2 = jax.random.uniform(k3, (hidden, data_dim), jnp.float32, -bound2, bound2)
    b2 = jax.random.uniform(k4, (1, data_dim), jnp.float32, -bound2, bound2)
    return w1, b1, w2, b2


def _reference(z, w1, b1, w2, b2):
    return jax.nn.sigmoid(jnp.maximum(z @ w1 + b1, 0.0) @ w2 + b2)


if __name__ == "__main__":
    key = jax.random.PRNGKey(0)
    kz, kz2, kp = jax.random.split(key, 3)

    latent_dim = 16
    data_dim = 32

    w1, b1, w2, b2 = init_generator_params(kp, latent_dim, data_dim)

    # One-time parameter prep: default bf16 matmul operands + an f32 variant.
    p_bf16 = prepare_generator_params(w1, b1, w2, b2)                 # default bf16
    p_f32 = prepare_generator_params(w1, b1, w2, b2, io_dtype=None)   # full f32

    # --- Small batch, f32 path: tight check against the reference ------------
    batch = 8
    z = jax.random.normal(kz, (batch, latent_dim), jnp.float32)
    out = jax.block_until_ready(generator_forward(z, *p_f32))
    ref = _reference(z, w1, b1, w2, b2)
    assert out.shape == (batch, data_dim)
    assert jnp.allclose(out, ref, atol=5e-3, rtol=0.0), "f32 path mismatch"

    # --- Non-multiple batch, default bf16 operands: grid + padding + 2 tiles --
    batch2 = 300
    z2 = jax.random.normal(kz2, (batch2, latent_dim), jnp.float32)
    out2 = jax.block_until_ready(generator_forward(z2, *p_bf16))
    assert out2.shape == (batch2, data_dim)

    # bf16-emulated reference (operands rounded to bf16, f32 accumulation).
    zb = z2.astype(jnp.bfloat16).astype(jnp.float32)
    w1b = w1.astype(jnp.bfloat16).astype(jnp.float32)
    w2b = w2.astype(jnp.bfloat16).astype(jnp.float32)
    hb = jnp.maximum(zb @ w1b + b1, 0.0).astype(jnp.bfloat16).astype(jnp.float32)
    ref2_bf = jax.nn.sigmoid(hb @ w2b + b2)
    assert jnp.allclose(out2, ref2_bf, atol=1e-2, rtol=0.0), "bf16 path mismatch"

    # Loose sanity check against the exact f32 reference as well.
    ref2_f32 = _reference(z2, w1, b1, w2, b2)
    assert jnp.allclose(out2, ref2_f32, atol=3e-2, rtol=0.0), "bf16 vs f32 drift"

    print("KERNEL_OK")
</pallas_src>

<mosaic_0001>
module attributes {stable_mosaic.version = 11 : i64} {
  func.func @_generator_kernel(%arg0: i32, %arg1: memref<8x16xf32, #tpu.memory_space<vmem>>, %arg2: memref<16x128xf32, #tpu.memory_space<vmem>>, %arg3: memref<1x128xf32, #tpu.memory_space<vmem>>, %arg4: memref<128x32xf32, #tpu.memory_space<vmem>>, %arg5: memref<1x32xf32, #tpu.memory_space<vmem>>, %arg6: memref<8x32xf32, #tpu.memory_space<vmem>>) attributes {dimension_semantics = [#tpu.dimension_semantics<parallel>], iteration_bounds = array<i64: 1>, scalar_prefetch = 0 : i64, scratch_operands = 0 : i64, tpu.core_type = #tpu.core_type<tc>, window_params = [{transform_indices = @transform_0, window_bounds = array<i64: 8, 16>}, {pipeline_mode = #tpu.pipeline_mode<synchronous>, transform_indices = @transform_1, window_bounds = array<i64: 16, 128>}, {pipeline_mode = #tpu.pipeline_mode<synchronous>, transform_indices = @transform_2, window_bounds = array<i64: 1, 128>}, {pipeline_mode = #tpu.pipeline_mode<synchronous>, transform_indices = @transform_3, window_bounds = array<i64: 128, 32>}, {pipeline_mode = #tpu.pipeline_mode<synchronous>, transform_indices = @transform_4, window_bounds = array<i64: 1, 32>}, {transform_indices = @transform_5, window_bounds = array<i64: 8, 32>}]} {
    %c0 = arith.constant 0 : index
    %c0_0 = arith.constant 0 : index
    %0 = vector.load %arg1[%c0, %c0_0] : memref<8x16xf32, #tpu.memory_space<vmem>>, vector<8x16xf32>
    %c0_1 = arith.constant 0 : index
    %c0_2 = arith.constant 0 : index
    %1 = vector.load %arg2[%c0_1, %c0_2] : memref<16x128xf32, #tpu.memory_space<vmem>>, vector<16x128xf32>
    %cst = arith.constant dense<0.000000e+00> : vector<8x128xf32>
    %2 = tpu.matmul %0, %1, %cst {dimension_numbers = #tpu.dot_dimension_numbers<[1], [0], [0], [1], [0, 0, 1, 1], [], []>} : vector<8x16xf32>, vector<16x128xf32>, vector<8x128xf32> -> vector<8x128xf32>
    %c0_3 = arith.constant 0 : index
    %c0_4 = arith.constant 0 : index
    %3 = vector.load %arg3[%c0_3, %c0_4] : memref<1x128xf32, #tpu.memory_space<vmem>>, vector<1x128xf32>
    %4 = vector.broadcast %3 : vector<1x128xf32> to vector<8x128xf32>
    %5 = arith.addf %2, %4 : vector<8x128xf32>
    %cst_5 = arith.constant 0.000000e+00 : f32
    %6 = vector.broadcast %cst_5 : f32 to vector<8x128xf32>
    %7 = arith.maximumf %5, %6 : vector<8x128xf32>
    %c0_6 = arith.constant 0 : index
    %c0_7 = arith.constant 0 : index
    %8 = vector.load %arg4[%c0_6, %c0_7] : memref<128x32xf32, #tpu.memory_space<vmem>>, vector<128x32xf32>
    %cst_8 = arith.constant dense<0.000000e+00> : vector<8x32xf32>
    %9 = tpu.matmul %7, %8, %cst_8 {dimension_numbers = #tpu.dot_dimension_numbers<[1], [0], [0], [1], [0, 0, 1, 1], [], []>} : vector<8x128xf32>, vector<128x32xf32>, vector<8x32xf32> -> vector<8x32xf32>
    %c0_9 = arith.constant 0 : index
    %c0_10 = arith.constant 0 : index
    %10 = vector.load %arg5[%c0_9, %c0_10] : memref<1x32xf32, #tpu.memory_space<vmem>>, vector<1x32xf32>
    %11 = vector.broadcast %10 : vector<1x32xf32> to vector<8x32xf32>
    %12 = arith.addf %9, %11 : vector<8x32xf32>
    %cst_11 = arith.constant 0.000000e+00 : f32
    %13 = vector.broadcast %cst_11 : f32 to vector<8x32xf32>
    %14 = arith.subf %13, %12 : vector<8x32xf32>
    %15 = math.exp %14 : vector<8x32xf32>
    %cst_12 = arith.constant 1.000000e+00 : f32
    %16 = vector.broadcast %cst_12 : f32 to vector<8x32xf32>
    %17 = arith.addf %16, %15 : vector<8x32xf32>
    %cst_13 = arith.constant 1.000000e+00 : f32
    %18 = vector.broadcast %cst_13 : f32 to vector<8x32xf32>
    %19 = arith.divf %18, %17 : vector<8x32xf32>
    %c0_14 = arith.constant 0 : index
    %c0_15 = arith.constant 0 : index
    %20 = vector.load %arg6[%c0_14, %c0_15] : memref<8x32xf32, #tpu.memory_space<vmem>>, vector<8x32xf32>
    tpu.vector_store %arg6[%c0_14, %c0_15], %19 {strides = array<i32>} : memref<8x32xf32, #tpu.memory_space<vmem>>, vector<8x32xf32>,
    return
  }
  func.func @transform_0(%arg0: i32) -> (i32, i32) {
    %c0_i32 = arith.constant 0 : i32
    %c0_i32_0 = arith.constant 0 : i32
    return %arg0, %c0_i32 : i32, i32
  }
  func.func @transform_1(%arg0: i32) -> (i32, i32) {
    %c0_i32 = arith.constant 0 : i32
    %c0_i32_0 = arith.constant 0 : i32
    %c0_i32_1 = arith.constant 0 : i32
    return %c0_i32, %c0_i32_0 : i32, i32
  }
  func.func @transform_2(%arg0: i32) -> (i32, i32) {
    %c0_i32 = arith.constant 0 : i32
    %c0_i32_0 = arith.constant 0 : i32
    %c0_i32_1 = arith.constant 0 : i32
    return %c0_i32, %c0_i32_0 : i32, i32
  }
  func.func @transform_3(%arg0: i32) -> (i32, i32) {
    %c0_i32 = arith.constant 0 : i32
    %c0_i32_0 = arith.constant 0 : i32
    %c0_i32_1 = arith.constant 0 : i32
    return %c0_i32, %c0_i32_0 : i32, i32
  }
  func.func @transform_4(%arg0: i32) -> (i32, i32) {
    %c0_i32 = arith.constant 0 : i32
    %c0_i32_0 = arith.constant 0 : i32
    %c0_i32_1 = arith.constant 0 : i32
    return %c0_i32, %c0_i32_0 : i32, i32
  }
  func.func @transform_5(%arg0: i32) -> (i32, i32) {
    %c0_i32 = arith.constant 0 : i32
    %c0_i32_0 = arith.constant 0 : i32
    return %arg0, %c0_i32 : i32, i32
  }
}

</mosaic_0001>

<bundles_post_ra>
// kernel: tpu_custom_call.1
= control target key start
LH: loop header
LB: loop body
LE: loop exit
PB: predicated region body
PF: predicated region fallthrough
CT: control target
= control target key end

     0   :  { %v315_v1 = vmov 0.0   ;;  %vm316_vm0 = vmmov 0   ;;  %vm31_vm1 = vcmask 130048   ;;  %s416_s0 = inlined_call_operand.vmem [shape: f32[8,16], index: 0, kind: input, shape index: {}]   ;;  %s417_s1 = inlined_call_operand.vmem [shape: f32[16,128], index: 1, kind: input, shape index: {}]   ;;  %s418_s2 = inlined_call_operand.vmem [shape: f32[1,128], index: 2, kind: input, shape index: {}]   ;;  %s419_s3 = inlined_call_operand.vmem [shape: f32[128,32], index: 3, kind: input, shape index: {}]   ;;  %s420_s4 = inlined_call_operand.vmem [shape: f32[1,32], index: 4, kind: input, shape index: {}]   ;;  %s421_s5 = inlined_call_operand.hbm [shape: f32[8,32], index: 5, kind: output, shape index: {}]  }
   0x1   :  { %v23_v0 = vld [vmem:[%s417_s1 + $0x8] sm:$0xff]  ;;  %244 = vmatprep.subr.mxu0 %v315_v1  ;;  %v22_v2 = vld [vmem:[%s417_s1] sm:$0xff]  ;;  %248 = vmatprep.mubr.msk.f32.mxu0 %vm316_vm0, %v315_v1  ;;  %v121_v3 = vld [vmem:[%s419_s3 + $0x78] sm:$0xff] }
   0x2   :  { %245 = vmatpush3.msra.mxu0 %v23_v0  ;;  %v21_v4 = vld [vmem:[%s416_s0] sm:$0xff]  ;;  %251 = vmatprep.subr.mxu1 %v315_v1  ;;  %v120_v5 = vld [vmem:[%s419_s3 + $0x70] sm:$0xff]  ;;  %v119_v6 = vld [vmem:[%s419_s3 + $0x68] sm:$0xff] }
   0x3   :  { %246 = vmatprep.subr.mxu0 %v315_v1  ;;  %252 = vmatpush3.msra.mxu1 %v121_v3 }
   0x4   :  { %247 = vmatpush3.msra.mxu0 %v22_v2  ;;  %253 = vmatprep.subr.mxu1 %v315_v1 }
   0x5   :  { %249 = vmatmul.mubr.msk.f32.vlgmr.msra.gmra.mxu0 %vm31_vm1, %v21_v4  ;;  %254 = vmatpush3.msra.mxu1 %v120_v5 }
   0x6   :  { %10 = vsyncpa [#allocation3], 0  ;;  %255 = vmatprep.subr.mxu1 %v315_v1  ;;  %v118_v7 = vld [vmem:[%s419_s3 + $0x60] sm:$0xff]  ;;  %283 = vmatprep.mubr.msk.f32.mxu1 %vm316_vm0, %v315_v1  ;;  %v117_v8 = vld [vmem:[%s419_s3 + $0x58] sm:$0xff]  ;;  %vm205_vm2 = vcmask 261120  }
   0x7   :  { %256 = vmatpush3.msra.mxu1 %v119_v6  ;;  %v116_v9 = vld [vmem:[%s419_s3 + $0x50] sm:$0xff]  ;;  %v115_v10 = vld [vmem:[%s419_s3 + $0x48] sm:$0xff]  ;;  %v114_v11 = vld [vmem:[%s419_s3 + $0x40] sm:$0xff] }
   0x8   :  { %257 = vmatprep.subr.mxu1 %v315_v1  ;;  %v113_v12 = vld [vmem:[%s419_s3 + $0x38] sm:$0xff]  ;;  %v112_v13 = vld [vmem:[%s419_s3 + $0x30] sm:$0xff]  ;;  %v111_v14 = vld [vmem:[%s419_s3 + $0x28] sm:$0xff] }
   0x9   :  { %258 = vmatpush3.msra.mxu1 %v118_v7  ;;  %v110_v15 = vld [vmem:[%s419_s3 + $0x20] sm:$0xff]  ;;  %v109_v16 = vld [vmem:[%s419_s3 + $0x18] sm:$0xff]  ;;  %v108_v17 = vld [vmem:[%s419_s3 + $0x10] sm:$0xff] }
   0xa   :  { %259 = vmatprep.subr.mxu1 %v315_v1  ;;  %v107_v18 = vld [vmem:[%s419_s3 + $0x8] sm:$0xff]  ;;  %v106_v19 = vld [vmem:[%s419_s3] sm:$0xff]  ;;  %s317_s3 = smov [#allocation2]  }
   0xb   :  { %260 = vmatpush3.msra.mxu1 %v117_v8  ;;  %v221_v20 = vld [vmem:[%s418_s2] ss:$0 sm:$0xff]  ;;  %s213_s2 = sshll.u32 %s317_s3, 4  ;;  %s214_s2 = int_to_ptr.vmem [resolvable:$true] %s213_s2 }
   0xc   :  { %261 = vmatprep.subr.mxu1 %v315_v1  ;;  %v223_v25 = vld [vmem:[%s420_s4] ss:$0 sm:$0xff]  ;;  %s293_s6 = scalar_lea.vmem %s214_s2, 128  ;;  %p298_p1 = scmp.lt.s32.totalorder %s214_s2, %s214_s2 }
   0xd   :  { %262 = vmatpush3.msra.mxu1 %v116_v9  ;;  %p294_p0 = scmp.ne.s32.totalorder %s214_s2, %s293_s6  ;;  %p299_p2 = scmp.lt.s32.totalorder %s293_s6, %s293_s6 }
   0xe   :  { %263 = vmatprep.subr.mxu1 %v315_v1 }
   0xf   :  { %264 = vmatpush3.msra.mxu1 %v115_v10  ;;  %p300_p3 = por %p299_p2, %p298_p1 }
  0x10   :  { %265 = vmatprep.subr.mxu1 %v315_v1 }
  0x11   :  { %266 = vmatpush3.msra.mxu1 %v114_v11  ;;  %p301_p4 = pnand %p300_p3, %p294_p0 }
  0x12   :  { %267 = vmatprep.subr.mxu1 %v315_v1 }
  0x13   :  { %268 = vmatpush3.msra.mxu1 %v113_v12 }
  0x14   :  { %269 = vmatprep.subr.mxu1 %v315_v1 }
  0x15   :  { %270 = vmatpush3.msra.mxu1 %v112_v13 }
  0x16   :  { %271 = vmatprep.subr.mxu1 %v315_v1 }
  0x17   :  { %272 = vmatpush3.msra.mxu1 %v111_v14 }
  0x18   :  { %273 = vmatprep.subr.mxu1 %v315_v1 }
  0x19   :  { %274 = vmatpush3.msra.mxu1 %v110_v15 }
  0x1a   :  { %275 = vmatprep.subr.mxu1 %v315_v1 }
  0x1b   :  { %276 = vmatpush3.msra.mxu1 %v109_v16 }
  0x1c   :  { %277 = vmatprep.subr.mxu1 %v315_v1 }
  0x1d   :  { %278 = vmatpush3.msra.mxu1 %v108_v17 }
  0x1e   :  { %279 = vmatprep.subr.mxu1 %v315_v1 }
  0x1f   :  { %280 = vmatpush3.msra.mxu1 %v107_v18 }
  0x20   :  { %281 = vmatprep.subr.mxu1 %v315_v1 }
  0x21   :  { %282 = vmatpush3.msra.mxu1 %v106_v19 }
  0xc5   :  { %v101_v21 = vpop.f32.mrf.mxu0 }
  0xc6   :  { %v102_v22 = vadd.f32 %v221_v20, %v101_v21 }
  0xc7   :  { %v250_v23 = vpop.f32.mrf.mxu0 }
  0xc8   :  { %v105_v24 = vmax.f32 %v102_v22, 0.0 }
  0xca   :  { %284 = vmatmul.mubr.f32.vlgmr.msra.gmra.mxu1 %v105_v24 }
 0x18a   :  { %v195_v26 = vpop.f32.mrf.mxu1 }
 0x18b   :  { %v196_v27 = vadd.f32 %v223_v25, %v195_v26 }
 0x18c   :  { %v285_v28 = vpop.f32.mrf.mxu1 }
 0x18d   :  { %v199_v29 = vsub.f32 0.0, %v196_v27 }
 0x18f   :  { %v200_v30 = vmul.f32 1.442695, %v199_v29 }
 0x191   :  { %289 = vpow2.f32 %v200_v30 }
 0x19e   :  { %v290_v31 = vpop.eup %289 }
 0x19f   :  { %v202_v32 = vadd.f32 1.0, %v290_v31 }
 0x1a1   :  { %291 = vrcp.f32 %v202_v32 }
 0x1ae   :  { %v292_v33 = vpop.eup %291 }
 0x1af   :  { %206 = vst.msk [vmem:[#allocation2] sm:$0xff] %vm205_vm2, %v292_v33 }
 0x1b0   :  { %304 = shalt.err (!%p301_p4)
}
 0x1b1   :  { %216 = dma.vmem_to_hbm [thread:$0]  %s214_s2, 128, %s421_s5, [#allocation3]  }
 0x1b2   :  { %313 = dma.done.wait [#allocation3], 128  }
 0x1b3   :  { %314 = vsyncadd [#allocation3], 4294967168 }
 0x1b4   :  { %220 = vsyncpa [#allocation3], 1 }

</bundles_post_ra>
